<compile_context>
chip_gen: v7x
topology: tpu7x:2x2x1
jax: 0.10.0
libtpu: 0.0.40
codegen_flags: <defaults>
</compile_context>

<pallas_src>
import functools

import jax
import jax.numpy as jnp
from jax import lax
from jax.experimental import pallas as pl
from jax.experimental.pallas import tpu as pltpu


def bottleneck_kernel(x_ref, s1_ref, b1_ref, w1t_ref, b2_ref, w2c_ref,
                      b3_ref, w3t_ref, wst_ref, mask_ref, o_ref, cols_ref,
                      *, H, W, Cmid):
    HW = H * W
    x = x_ref[0]                                             # (Cin, HW) lane-dense

    # --- BN1 (folded scale/bias) + ReLU ---
    h1 = jnp.maximum(x * s1_ref[...] + b1_ref[...], 0.0)     # (Cin, HW)

    # --- conv1 (1x1): BN2 scale folded into w1t rows; bias + ReLU on VPU ---
    m1 = jnp.dot(w1t_ref[...], h1, preferred_element_type=jnp.float32)   # (Cmid, HW)
    h2 = jnp.maximum(m1 + b2_ref[...], 0.0)

    # --- conv2 (3x3, stride 1, pad 1) as ONE im2col matmul ---
    # Build the (9*Cmid, HW) column matrix: lane roll (XLU) per tap + border mask,
    # stored lane-dense into VMEM scratch; then a single MXU dot with K = 9*Cmid.
    masks = mask_ref[...]                                    # (9, HW)
    t = 0
    for dy in (-1, 0, 1):
        for dx in (-1, 0, 1):
            shift = (-(dy * W + dx)) % HW                    # out[p] = h2[p + dy*W + dx]
            tap = h2 if shift == 0 else pltpu.roll(h2, shift, axis=1)
            if not (dy == 0 and dx == 0):
                tap = tap * masks[t:t + 1, :]                # zero out-of-image taps
            cols_ref[pl.ds(t * Cmid, Cmid), :] = tap
            t += 1
    m2 = jnp.dot(w2c_ref[...], cols_ref[...],
                 preferred_element_type=jnp.float32)         # (Cmid, HW)

    # --- BN3 (scale folded into w2col) bias + ReLU ---
    h3 = jnp.maximum(m2 + b3_ref[...], 0.0)

    # --- Dropout2d: identity in inference mode ---

    # --- conv3 (1x1) + shortcut (1x1 on the raw, pre-BN input) ---
    y = jnp.dot(w3t_ref[...], h3, preferred_element_type=jnp.float32)    # (Cout, HW)
    y = y + jnp.dot(wst_ref[...], x, preferred_element_type=jnp.float32)

    o_ref[0] = y                                             # (Cout, HW): 256 lanes, unmasked stores


def bottleneck_v2_block(x_nchw, params):
    s1, b1, w1, s2, b2, w2, s3, b3, w3, ws = params
    N, Cin, H, W = x_nchw.shape
    Cmid = w1.shape[1]
    Cout = w3.shape[1]
    HW = H * W

    # Consume NCHW directly; collapsing (H, W) -> HW is a free row-major reshape
    # (no transpose, no extra HBM round trips).
    x_flat = x_nchw.reshape(N, Cin, HW).astype(jnp.float32)

    # Static host-side weight transforms:
    #   fold BN2 scale into conv1 output channels, BN3 scale into conv2 output channels.
    w1t = (w1 * s2[None, :]).T                               # (Cmid, Cin)
    w2col = s3[:, None] * jnp.transpose(w2, (3, 0, 1, 2)).reshape(Cmid, 9 * Cmid)
    w3t = w3.T                                               # (Cout, Cmid)
    wst = ws.T                                               # (Cout, Cin)
    s1c = s1.reshape(Cin, 1)
    b1c = b1.reshape(Cin, 1)
    b2c = b2.reshape(Cmid, 1)
    b3c = b3.reshape(Cmid, 1)

    # Border-validity masks for the 9 conv taps in flattened row-major HW space.
    ys = jnp.arange(H)
    xs = jnp.arange(W)
    rows = []
    for dy in (-1, 0, 1):
        for dx in (-1, 0, 1):
            my = (ys + dy >= 0) & (ys + dy < H)
            mx = (xs + dx >= 0) & (xs + dx < W)
            rows.append((my[:, None] & mx[None, :]).reshape(HW))
    masks = jnp.stack(rows).astype(jnp.float32)              # (9, HW)

    kernel = functools.partial(bottleneck_kernel, H=H, W=W, Cmid=Cmid)

    def full(shape):
        return pl.BlockSpec(shape, lambda n, _nd=len(shape): (0,) * _nd)

    matmul_flops = 2 * HW * (Cin * Cmid + 9 * Cmid * Cmid + Cmid * Cout + Cin * Cout)
    cost = pl.CostEstimate(
        flops=N * matmul_flops,
        transcendentals=0,
        bytes_accessed=4 * (N * HW * (Cin + Cout) + 9 * HW
                            + Cin * Cmid + 9 * Cmid * Cmid + Cmid * Cout + Cin * Cout
                            + 2 * Cin + 2 * Cmid))

    out_flat = pl.pallas_call(
        kernel,
        out_shape=jax.ShapeDtypeStruct((N, Cout, HW), jnp.float32),
        grid_spec=pltpu.PrefetchScalarGridSpec(
            num_scalar_prefetch=0,
            grid=(N,),
            in_specs=[
                pl.BlockSpec((1, Cin, HW), lambda n: (n, 0, 0)),  # x (per image)
                full((Cin, 1)), full((Cin, 1)),                   # BN1 scale / bias
                full((Cmid, Cin)),                                # conv1 weight (s2-folded, transposed)
                full((Cmid, 1)),                                  # BN2 bias
                full((Cmid, 9 * Cmid)),                           # conv2 im2col weight (s3-folded)
                full((Cmid, 1)),                                  # BN3 bias
                full((Cout, Cmid)),                               # conv3 weight (transposed)
                full((Cout, Cin)),                                # shortcut weight (transposed)
                full((9, HW)),                                    # conv2 border masks
            ],
            out_specs=pl.BlockSpec((1, Cout, HW), lambda n: (n, 0, 0)),
            scratch_shapes=[pltpu.VMEM((9 * Cmid, HW), jnp.float32)],  # im2col columns
        ),
        compiler_params=pltpu.CompilerParams(
            dimension_semantics=("parallel",)),
        cost_estimate=cost,
    )(x_flat, s1c, b1c, w1t, b2c, w2col, b3c, w3t, wst, masks)

    return out_flat.reshape(N, Cout, H, W)                   # free reshape back to NCHW


def init_params(key, in_d, out_d):
    mid_d = max(int(out_d / 4), 1)
    eps = 1e-5
    keys = jax.random.split(key, 8)

    def bn(k, c):
        kg, kb, km, kv = jax.random.split(k, 4)
        gamma = 1.0 + 0.1 * jax.random.normal(kg, (c,), jnp.float32)
        beta = 0.1 * jax.random.normal(kb, (c,), jnp.float32)
        mean = 0.1 * jax.random.normal(km, (c,), jnp.float32)
        var = 1.0 + 0.1 * jnp.abs(jax.random.normal(kv, (c,), jnp.float32))
        scale = gamma * lax.rsqrt(var + eps)
        bias = beta - mean * scale
        return scale, bias                                    # (c,), (c,)

    s1, b1 = bn(keys[0], in_d)
    s2, b2 = bn(keys[1], mid_d)
    s3, b3 = bn(keys[2], mid_d)
    w1 = 0.1 * jax.random.normal(keys[3], (in_d, mid_d), jnp.float32)         # 1x1 (I,O)
    w2 = 0.1 * jax.random.normal(keys[4], (3, 3, mid_d, mid_d), jnp.float32)  # HWIO
    w3 = 0.1 * jax.random.normal(keys[5], (mid_d, out_d), jnp.float32)        # 1x1 (I,O)
    ws = 0.1 * jax.random.normal(keys[6], (in_d, out_d), jnp.float32)         # shortcut 1x1
    return (s1, b1, w1, s2, b2, w2, s3, b3, w3, ws)


def ref_forward(x_nchw, params):
    """Pure-JAX reference (lax.conv) for correctness checking."""
    s1, b1, w1, s2, b2, w2, s3, b3, w3, ws = params
    dn = ('NHWC', 'HWIO', 'NHWC')
    x = jnp.transpose(x_nchw, (0, 2, 3, 1))
    h = jnp.maximum(x * s1 + b1, 0.0)
    h = lax.conv_general_dilated(h, w1.reshape(1, 1, *w1.shape), (1, 1), 'VALID',
                                 dimension_numbers=dn)
    h = jnp.maximum(h * s2 + b2, 0.0)
    h = lax.conv_general_dilated(h, w2, (1, 1), ((1, 1), (1, 1)),
                                 dimension_numbers=dn)
    h = jnp.maximum(h * s3 + b3, 0.0)
    h = lax.conv_general_dilated(h, w3.reshape(1, 1, *w3.shape), (1, 1), 'VALID',
                                 dimension_numbers=dn)
    sc = lax.conv_general_dilated(x, ws.reshape(1, 1, *ws.shape), (1, 1), 'VALID',
                                  dimension_numbers=dn)
    return jnp.transpose(h + sc, (0, 3, 1, 2))


if __name__ == "__main__":
    key = jax.random.PRNGKey(0)
    kx, kp = jax.random.split(key)

    N, in_d, out_d, H, W = 2, 4, 8, 16, 16          # stride = 1
    x = jax.random.normal(kx, (N, in_d, H, W), jnp.float32)   # NCHW, like PyTorch
    params = init_params(kp, in_d, out_d)

    out = jax.block_until_ready(bottleneck_v2_block(x, params))
    ref = jax.block_until_ready(ref_forward(x, params))

    assert out.shape == (N, out_d, H, W), out.shape
    max_err = float(jnp.max(jnp.abs(out - ref)))
    assert jnp.allclose(out, ref, atol=1e-2, rtol=1e-2), max_err
    print("KERNEL_OK")
</pallas_src>

<mosaic_0001>
module attributes {stable_mosaic.version = 11 : i64} {
  func.func @bottleneck_kernel(%arg0: i32, %arg1: memref<1x4x256xf32, #tpu.memory_space<vmem>>, %arg2: memref<4x1xf32, #tpu.memory_space<vmem>>, %arg3: memref<4x1xf32, #tpu.memory_space<vmem>>, %arg4: memref<2x4xf32, #tpu.memory_space<vmem>>, %arg5: memref<2x1xf32, #tpu.memory_space<vmem>>, %arg6: memref<2x18xf32, #tpu.memory_space<vmem>>, %arg7: memref<2x1xf32, #tpu.memory_space<vmem>>, %arg8: memref<8x2xf32, #tpu.memory_space<vmem>>, %arg9: memref<8x4xf32, #tpu.memory_space<vmem>>, %arg10: memref<9x256xf32, #tpu.memory_space<vmem>>, %arg11: memref<1x8x256xf32, #tpu.memory_space<vmem>>, %arg12: memref<18x256xf32, #tpu.memory_space<vmem>>) attributes {dimension_semantics = [#tpu.dimension_semantics<parallel>], iteration_bounds = array<i64: 2>, scalar_prefetch = 0 : i64, scratch_operands = 1 : i64, tpu.core_type = #tpu.core_type<tc>, window_params = [{transform_indices = @transform_0, window_bounds = array<i64: 1, 4, 256>}, {pipeline_mode = #tpu.pipeline_mode<synchronous>, transform_indices = @transform_1, window_bounds = array<i64: 4, 1>}, {pipeline_mode = #tpu.pipeline_mode<synchronous>, transform_indices = @transform_2, window_bounds = array<i64: 4, 1>}, {pipeline_mode = #tpu.pipeline_mode<synchronous>, transform_indices = @transform_3, window_bounds = array<i64: 2, 4>}, {pipeline_mode = #tpu.pipeline_mode<synchronous>, transform_indices = @transform_4, window_bounds = array<i64: 2, 1>}, {pipeline_mode = #tpu.pipeline_mode<synchronous>, transform_indices = @transform_5, window_bounds = array<i64: 2, 18>}, {pipeline_mode = #tpu.pipeline_mode<synchronous>, transform_indices = @transform_6, window_bounds = array<i64: 2, 1>}, {pipeline_mode = #tpu.pipeline_mode<synchronous>, transform_indices = @transform_7, window_bounds = array<i64: 8, 2>}, {pipeline_mode = #tpu.pipeline_mode<synchronous>, transform_indices = @transform_8, window_bounds = array<i64: 8, 4>}, {pipeline_mode = #tpu.pipeline_mode<synchronous>, transform_indices = @transform_9, window_bounds = array<i64: 9, 256>}, {transform_indices = @transform_10, window_bounds = array<i64: 1, 8, 256>}]} {
    %c0 = arith.constant 0 : index
    %c0_0 = arith.constant 0 : index
    %c0_1 = arith.constant 0 : index
    %0 = vector.load %arg1[%c0, %c0_0, %c0_1] : memref<1x4x256xf32, #tpu.memory_space<vmem>>, vector<1x4x256xf32>
    %1 = vector.shape_cast %0 : vector<1x4x256xf32> to vector<4x256xf32>
    %c0_2 = arith.constant 0 : index
    %c0_3 = arith.constant 0 : index
    %2 = vector.load %arg2[%c0_2, %c0_3] : memref<4x1xf32, #tpu.memory_space<vmem>>, vector<4x1xf32>
    %3 = vector.broadcast %2 : vector<4x1xf32> to vector<4x256xf32>
    %4 = arith.mulf %1, %3 : vector<4x256xf32>
    %c0_4 = arith.constant 0 : index
    %c0_5 = arith.constant 0 : index
    %5 = vector.load %arg3[%c0_4, %c0_5] : memref<4x1xf32, #tpu.memory_space<vmem>>, vector<4x1xf32>
    %6 = vector.broadcast %5 : vector<4x1xf32> to vector<4x256xf32>
    %7 = arith.addf %4, %6 : vector<4x256xf32>
    %cst = arith.constant 0.000000e+00 : f32
    %8 = vector.broadcast %cst : f32 to vector<4x256xf32>
    %9 = arith.maximumf %7, %8 : vector<4x256xf32>
    %c0_6 = arith.constant 0 : index
    %c0_7 = arith.constant 0 : index
    %10 = vector.load %arg4[%c0_6, %c0_7] : memref<2x4xf32, #tpu.memory_space<vmem>>, vector<2x4xf32>
    %cst_8 = arith.constant dense<0.000000e+00> : vector<2x256xf32>
    %11 = tpu.matmul %10, %9, %cst_8 {dimension_numbers = #tpu.dot_dimension_numbers<[1], [0], [0], [1], [0, 0, 1, 1], [], []>} : vector<2x4xf32>, vector<4x256xf32>, vector<2x256xf32> -> vector<2x256xf32>
    %c0_9 = arith.constant 0 : index
    %c0_10 = arith.constant 0 : index
    %12 = vector.load %arg5[%c0_9, %c0_10] : memref<2x1xf32, #tpu.memory_space<vmem>>, vector<2x1xf32>
    %13 = vector.broadcast %12 : vector<2x1xf32> to vector<2x256xf32>
    %14 = arith.addf %11, %13 : vector<2x256xf32>
    %cst_11 = arith.constant 0.000000e+00 : f32
    %15 = vector.broadcast %cst_11 : f32 to vector<2x256xf32>
    %16 = arith.maximumf %14, %15 : vector<2x256xf32>
    %c0_12 = arith.constant 0 : index
    %c0_13 = arith.constant 0 : index
    %17 = vector.load %arg10[%c0_12, %c0_13] : memref<9x256xf32, #tpu.memory_space<vmem>>, vector<9x256xf32>
    %c17_i32 = arith.constant 17 : i32
    %18 = tpu.dynamic_rotate %16 by %c17_i32 dim 1 : vector<2x256xf32>, i32 -> vector<2x256xf32>
    %19 = vector.extract_strided_slice %17 {offsets = [0, 0], sizes = [1, 256], strides = [1, 1]} : vector<9x256xf32> to vector<1x256xf32>
    %20 = vector.broadcast %19 : vector<1x256xf32> to vector<2x256xf32>
    %21 = arith.mulf %18, %20 : vector<2x256xf32>
    %c0_14 = arith.constant 0 : index
    %c0_15 = arith.constant 0 : index
    %22 = vector.load %arg12[%c0_14, %c0_15] : memref<18x256xf32, #tpu.memory_space<vmem>>, vector<2x256xf32>
    tpu.vector_store %arg12[%c0_14, %c0_15], %21 {strides = array<i32>} : memref<18x256xf32, #tpu.memory_space<vmem>>, vector<2x256xf32>,
    %c16_i32 = arith.constant 16 : i32
    %23 = tpu.dynamic_rotate %16 by %c16_i32 dim 1 : vector<2x256xf32>, i32 -> vector<2x256xf32>
    %24 = vector.extract_strided_slice %17 {offsets = [1, 0], sizes = [1, 256], strides = [1, 1]} : vector<9x256xf32> to vector<1x256xf32>
    %25 = vector.broadcast %24 : vector<1x256xf32> to vector<2x256xf32>
    %26 = arith.mulf %23, %25 : vector<2x256xf32>
    %c2 = arith.constant 2 : index
    %c0_16 = arith.constant 0 : index
    %27 = vector.load %arg12[%c2, %c0_16] : memref<18x256xf32, #tpu.memory_space<vmem>>, vector<2x256xf32>
    tpu.vector_store %arg12[%c2, %c0_16], %26 {strides = array<i32>} : memref<18x256xf32, #tpu.memory_space<vmem>>, vector<2x256xf32>,
    %c15_i32 = arith.constant 15 : i32
    %28 = tpu.dynamic_rotate %16 by %c15_i32 dim 1 : vector<2x256xf32>, i32 -> vector<2x256xf32>
    %29 = vector.extract_strided_slice %17 {offsets = [2, 0], sizes = [1, 256], strides = [1, 1]} : vector<9x256xf32> to vector<1x256xf32>
    %30 = vector.broadcast %29 : vector<1x256xf32> to vector<2x256xf32>
    %31 = arith.mulf %28, %30 : vector<2x256xf32>
    %c4 = arith.constant 4 : index
    %c0_17 = arith.constant 0 : index
    %32 = vector.load %arg12[%c4, %c0_17] : memref<18x256xf32, #tpu.memory_space<vmem>>, vector<2x256xf32>
    tpu.vector_store %arg12[%c4, %c0_17], %31 {strides = array<i32>} : memref<18x256xf32, #tpu.memory_space<vmem>>, vector<2x256xf32>,
    %c1_i32 = arith.constant 1 : i32
    %33 = tpu.dynamic_rotate %16 by %c1_i32 dim 1 : vector<2x256xf32>, i32 -> vector<2x256xf32>
    %34 = vector.extract_strided_slice %17 {offsets = [3, 0], sizes = [1, 256], strides = [1, 1]} : vector<9x256xf32> to vector<1x256xf32>
    %35 = vector.broadcast %34 : vector<1x256xf32> to vector<2x256xf32>
    %36 = arith.mulf %33, %35 : vector<2x256xf32>
    %c6 = arith.constant 6 : index
    %c0_18 = arith.constant 0 : index
    %37 = vector.load %arg12[%c6, %c0_18] : memref<18x256xf32, #tpu.memory_space<vmem>>, vector<2x256xf32>
    tpu.vector_store %arg12[%c6, %c0_18], %36 {strides = array<i32>} : memref<18x256xf32, #tpu.memory_space<vmem>>, vector<2x256xf32>,
    %c8 = arith.constant 8 : index
    %c0_19 = arith.constant 0 : index
    %38 = vector.load %arg12[%c8, %c0_19] : memref<18x256xf32, #tpu.memory_space<vmem>>, vector<2x256xf32>
    tpu.vector_store %arg12[%c8, %c0_19], %16 {strides = array<i32>} : memref<18x256xf32, #tpu.memory_space<vmem>>, vector<2x256xf32>,
    %c255_i32 = arith.constant 255 : i32
    %39 = tpu.dynamic_rotate %16 by %c255_i32 dim 1 : vector<2x256xf32>, i32 -> vector<2x256xf32>
    %40 = vector.extract_strided_slice %17 {offsets = [5, 0], sizes = [1, 256], strides = [1, 1]} : vector<9x256xf32> to vector<1x256xf32>
    %41 = vector.broadcast %40 : vector<1x256xf32> to vector<2x256xf32>
    %42 = arith.mulf %39, %41 : vector<2x256xf32>
    %c10 = arith.constant 10 : index
    %c0_20 = arith.constant 0 : index
    %43 = vector.load %arg12[%c10, %c0_20] : memref<18x256xf32, #tpu.memory_space<vmem>>, vector<2x256xf32>
    tpu.vector_store %arg12[%c10, %c0_20], %42 {strides = array<i32>} : memref<18x256xf32, #tpu.memory_space<vmem>>, vector<2x256xf32>,
    %c241_i32 = arith.constant 241 : i32
    %44 = tpu.dynamic_rotate %16 by %c241_i32 dim 1 : vector<2x256xf32>, i32 -> vector<2x256xf32>
    %45 = vector.extract_strided_slice %17 {offsets = [6, 0], sizes = [1, 256], strides = [1, 1]} : vector<9x256xf32> to vector<1x256xf32>
    %46 = vector.broadcast %45 : vector<1x256xf32> to vector<2x256xf32>
    %47 = arith.mulf %44, %46 : vector<2x256xf32>
    %c12 = arith.constant 12 : index
    %c0_21 = arith.constant 0 : index
    %48 = vector.load %arg12[%c12, %c0_21] : memref<18x256xf32, #tpu.memory_space<vmem>>, vector<2x256xf32>
    tpu.vector_store %arg12[%c12, %c0_21], %47 {strides = array<i32>} : memref<18x256xf32, #tpu.memory_space<vmem>>, vector<2x256xf32>,
    %c240_i32 = arith.constant 240 : i32
    %49 = tpu.dynamic_rotate %16 by %c240_i32 dim 1 : vector<2x256xf32>, i32 -> vector<2x256xf32>
    %50 = vector.extract_strided_slice %17 {offsets = [7, 0], sizes = [1, 256], strides = [1, 1]} : vector<9x256xf32> to vector<1x256xf32>
    %51 = vector.broadcast %50 : vector<1x256xf32> to vector<2x256xf32>
    %52 = arith.mulf %49, %51 : vector<2x256xf32>
    %c14 = arith.constant 14 : index
    %c0_22 = arith.constant 0 : index
    %53 = vector.load %arg12[%c14, %c0_22] : memref<18x256xf32, #tpu.memory_space<vmem>>, vector<2x256xf32>
    tpu.vector_store %arg12[%c14, %c0_22], %52 {strides = array<i32>} : memref<18x256xf32, #tpu.memory_space<vmem>>, vector<2x256xf32>,
    %c239_i32 = arith.constant 239 : i32
    %54 = tpu.dynamic_rotate %16 by %c239_i32 dim 1 : vector<2x256xf32>, i32 -> vector<2x256xf32>
    %55 = vector.extract_strided_slice %17 {offsets = [8, 0], sizes = [1, 256], strides = [1, 1]} : vector<9x256xf32> to vector<1x256xf32>
    %56 = vector.broadcast %55 : vector<1x256xf32> to vector<2x256xf32>
    %57 = arith.mulf %54, %56 : vector<2x256xf32>
    %c16 = arith.constant 16 : index
    %c0_23 = arith.constant 0 : index
    %58 = vector.load %arg12[%c16, %c0_23] : memref<18x256xf32, #tpu.memory_space<vmem>>, vector<2x256xf32>
    tpu.vector_store %arg12[%c16, %c0_23], %57 {strides = array<i32>} : memref<18x256xf32, #tpu.memory_space<vmem>>, vector<2x256xf32>,
    %c0_24 = arith.constant 0 : index
    %c0_25 = arith.constant 0 : index
    %59 = vector.load %arg6[%c0_24, %c0_25] : memref<2x18xf32, #tpu.memory_space<vmem>>, vector<2x18xf32>
    %c0_26 = arith.constant 0 : index
    %c0_27 = arith.constant 0 : index
    %60 = vector.load %arg12[%c0_26, %c0_27] : memref<18x256xf32, #tpu.memory_space<vmem>>, vector<18x256xf32>
    %cst_28 = arith.constant dense<0.000000e+00> : vector<2x256xf32>
    %61 = tpu.matmul %59, %60, %cst_28 {dimension_numbers = #tpu.dot_dimension_numbers<[1], [0], [0], [1], [0, 0, 1, 1], [], []>} : vector<2x18xf32>, vector<18x256xf32>, vector<2x256xf32> -> vector<2x256xf32>
    %c0_29 = arith.constant 0 : index
    %c0_30 = arith.constant 0 : index
    %62 = vector.load %arg7[%c0_29, %c0_30] : memref<2x1xf32, #tpu.memory_space<vmem>>, vector<2x1xf32>
    %63 = vector.broadcast %62 : vector<2x1xf32> to vector<2x256xf32>
    %64 = arith.addf %61, %63 : vector<2x256xf32>
    %cst_31 = arith.constant 0.000000e+00 : f32
    %65 = vector.broadcast %cst_31 : f32 to vector<2x256xf32>
    %66 = arith.maximumf %64, %65 : vector<2x256xf32>
    %c0_32 = arith.constant 0 : index
    %c0_33 = arith.constant 0 : index
    %67 = vector.load %arg8[%c0_32, %c0_33] : memref<8x2xf32, #tpu.memory_space<vmem>>, vector<8x2xf32>
    %cst_34 = arith.constant dense<0.000000e+00> : vector<8x256xf32>
    %68 = tpu.matmul %67, %66, %cst_34 {dimension_numbers = #tpu.dot_dimension_numbers<[1], [0], [0], [1], [0, 0, 1, 1], [], []>} : vector<8x2xf32>, vector<2x256xf32>, vector<8x256xf32> -> vector<8x256xf32>
    %c0_35 = arith.constant 0 : index
    %c0_36 = arith.constant 0 : index
    %69 = vector.load %arg9[%c0_35, %c0_36] : memref<8x4xf32, #tpu.memory_space<vmem>>, vector<8x4xf32>
    %cst_37 = arith.constant dense<0.000000e+00> : vector<8x256xf32>
    %70 = tpu.matmul %69, %1, %cst_37 {dimension_numbers = #tpu.dot_dimension_numbers<[1], [0], [0], [1], [0, 0, 1, 1], [], []>} : vector<8x4xf32>, vector<4x256xf32>, vector<8x256xf32> -> vector<8x256xf32>
    %71 = arith.addf %68, %70 : vector<8x256xf32>
    %c0_38 = arith.constant 0 : index
    %c0_39 = arith.constant 0 : index
    %c0_40 = arith.constant 0 : index
    %72 = vector.load %arg11[%c0_38, %c0_39, %c0_40] : memref<1x8x256xf32, #tpu.memory_space<vmem>>, vector<1x8x256xf32>
    %73 = vector.shape_cast %72 : vector<1x8x256xf32> to vector<8x256xf32>
    %74 = vector.shape_cast %71 : vector<8x256xf32> to vector<1x8x256xf32>
    tpu.vector_store %arg11[%c0_38, %c0_39, %c0_40], %74 {strides = array<i32>} : memref<1x8x256xf32, #tpu.memory_space<vmem>>, vector<1x8x256xf32>,
    return
  }
  func.func @transform_0(%arg0: i32) -> (i32, i32, i32) {
    %c0_i32 = arith.constant 0 : i32
    %c0_i32_0 = arith.constant 0 : i32
    %c0_i32_1 = arith.constant 0 : i32
    return %arg0, %c0_i32, %c0_i32_0 : i32, i32, i32
  }
  func.func @transform_1(%arg0: i32) -> (i32, i32) {
    %c0_i32 = arith.constant 0 : i32
    %c0_i32_0 = arith.constant 0 : i32
    %c0_i32_1 = arith.constant 0 : i32
    return %c0_i32, %c0_i32_0 : i32, i32
  }
  func.func @transform_2(%arg0: i32) -> (i32, i32) {
    %c0_i32 = arith.constant 0 : i32
    %c0_i32_0 = arith.constant 0 : i32
    %c0_i32_1 = arith.constant 0 : i32
    return %c0_i32, %c0_i32_0 : i32, i32
  }
  func.func @transform_3(%arg0: i32) -> (i32, i32) {
    %c0_i32 = arith.constant 0 : i32
    %c0_i32_0 = arith.constant 0 : i32
    %c0_i32_1 = arith.constant 0 : i32
    return %c0_i32, %c0_i32_0 : i32, i32
  }
  func.func @transform_4(%arg0: i32) -> (i32, i32) {
    %c0_i32 = arith.constant 0 : i32
    %c0_i32_0 = arith.constant 0 : i32
    %c0_i32_1 = arith.constant 0 : i32
    return %c0_i32, %c0_i32_0 : i32, i32
  }
  func.func @transform_5(%arg0: i32) -> (i32, i32) {
    %c0_i32 = arith.constant 0 : i32
    %c0_i32_0 = arith.constant 0 : i32
    %c0_i32_1 = arith.constant 0 : i32
    return %c0_i32, %c0_i32_0 : i32, i32
  }
  func.func @transform_6(%arg0: i32) -> (i32, i32) {
    %c0_i32 = arith.constant 0 : i32
    %c0_i32_0 = arith.constant 0 : i32
    %c0_i32_1 = arith.constant 0 : i32
    return %c0_i32, %c0_i32_0 : i32, i32
  }
  func.func @transform_7(%arg0: i32) -> (i32, i32) {
    %c0_i32 = arith.constant 0 : i32
    %c0_i32_0 = arith.constant 0 : i32
    %c0_i32_1 = arith.constant 0 : i32
    return %c0_i32, %c0_i32_0 : i32, i32
  }
  func.func @transform_8(%arg0: i32) -> (i32, i32) {
    %c0_i32 = arith.constant 0 : i32
    %c0_i32_0 = arith.constant 0 : i32
    %c0_i32_1 = arith.constant 0 : i32
    return %c0_i32, %c0_i32_0 : i32, i32
  }
  func.func @transform_9(%arg0: i32) -> (i32, i32) {
    %c0_i32 = arith.constant 0 : i32
    %c0_i32_0 = arith.constant 0 : i32
    %c0_i32_1 = arith.constant 0 : i32
    return %c0_i32, %c0_i32_0 : i32, i32
  }
  func.func @transform_10(%arg0: i32) -> (i32, i32, i32) {
    %c0_i32 = arith.constant 0 : i32
    %c0_i32_0 = arith.constant 0 : i32
    %c0_i32_1 = arith.constant 0 : i32
    return %arg0, %c0_i32, %c0_i32_0 : i32, i32, i32
  }
}

</mosaic_0001>

<bundles_post_ra>
// kernel: tpu_custom_call.1
= control target key start
LH: loop header
LB: loop body
LE: loop exit
PB: predicated region body
PF: predicated region fallthrough
CT: control target
= control target key end

     0   :  { %15 = vsyncpa [#allocation4], 0  ;;  %s1417_s0 = inlined_call_operand.vmem [shape: f32[2,4,256], index: 0, kind: input, shape index: {}]   ;;  %s1418_s1 = inlined_call_operand.vmem [shape: f32[4,1], index: 1, kind: input, shape index: {}]   ;;  %s1419_s2 = inlined_call_operand.vmem [shape: f32[4,1], index: 2, kind: input, shape index: {}]   ;;  %s1420_s3 = inlined_call_operand.vmem [shape: f32[2,4], index: 3, kind: input, shape index: {}]   ;;  %s1421_s4 = inlined_call_operand.vmem [shape: f32[2,1], index: 4, kind: input, shape index: {}]   ;;  %s1422_s5 = inlined_call_operand.vmem [shape: f32[2,18], index: 5, kind: input, shape index: {}]   ;;  %s1423_s6 = inlined_call_operand.vmem [shape: f32[2,1], index: 6, kind: input, shape index: {}]   ;;  %s1424_s7 = inlined_call_operand.vmem [shape: f32[8,2], index: 7, kind: input, shape index: {}]   ;;  %s1425_s8 = inlined_call_operand.vmem [shape: f32[8,4], index: 8, kind: input, shape index: {}]   ;;  %s1426_s9 = inlined_call_operand.vmem [shape: f32[9,256], index: 9, kind: input, shape index: {}]   ;;  %s1427_s10 = inlined_call_operand.hbm [shape: f32[2,8,256], index: 10, kind: output, shape index: {}]  }
   0x1   :  { %17 = vsyncpa [#allocation4 + $0x1], 0  ;;  %s1229_s13 = smov 0   ;;  %s1231_s14 = smov 0  }
   0x2   :  { %s1233_s15 = smov 0   ;;  %s1235_s16 = smov 0  }
   0x3 LB: > { %s1250_s17 = sadd.s32 4294967295, %s1160_s16   ;;  %s1011_s18 = sadd.s32 4294967294, %s1160_s16   ;;  %s1160_s16 = sphi %s1235_s16, %s1433_s16   ;;  %s1156_s15 = sphi %s1233_s15, %s1432_s15   ;;  %s1152_s14 = sphi %s1231_s14, %s1431_s14   ;;  %s1148_s13 = sphi %s1229_s13, %s1430_s13  }
   0x4   : > { %s1254_s19 = sadd.s32 1, %s1160_s16   ;;  %s245_s20 = sadd.s32 1, %s1156_s15 }
   0x5   : > { %s242_s21 = ssub.s32 %s1160_s16, %s1254_s19  ;;  %p255_p0 = scmp.ne.s32.totalorder %s1156_s15, %s1152_s14 }
   0x6   : > { %p243_p1 = scmp.eq.s32.totalorder %s242_s21, 0  ;;  %p256_p2 = scmp.eq.s32.totalorder %s1250_s17, 1 }
   0x7   : > { %p261_p3 = scmp.ne.s32.totalorder %s1152_s14, %s1148_s13  ;;  %p262_p4 = scmp.eq.s32.totalorder %s1011_s18, 1 }
   0x8   : > { %s1265_s22 = scalar_select %p243_p1, %s1156_s15, %s245_s20  }
   0x9   : > { %p1267_p5 = por %p256_p2, %p255_p0  ;;  %p1271_p6 = por %p262_p4, %p261_p3 }
   0xa   : > { %p1014_p7 = scmp.ge.s32.totalorder %s1160_s16, 1  ;;  %p315_p8 = scmp.lt.s32.totalorder %s1160_s16, 3 }
   0xc   : > { %p316_p9 = pnand %p1014_p7, %p315_p8 }
   0xd   : > { %v359_v0 = vld [vmem:[%s1418_s1] sm:$0xf] (!%p316_p9)  ;;  %v1162_v1 = vmov (!%p316_p9), 0   ;;  %v1163_v3 = vmov (!%p316_p9), 0.0   ;;  %p353_p10 = scmp.lt.s32.totalorder (!%p316_p9), %s1250_s17, 1  ;;  %v367_v7 = vlaneseq (!%p316_p9)  ;;  %vm401_vm0 = vcmask (!%p316_p9), 1043456  }
   0xe   : > { %319 = sbr.rel (%p316_p9) target bundleno = 978 (0x3d2), region = 60  ;;  %1095 = vset.pattern.permute.xlu0 (!%p316_p9), %v1162_v1  ;;  %1096 = vset.pattern.permute.xlu1 (!%p316_p9), %v1162_v1  ;;  %v373_v2 = vld [vmem:[%s1419_s2] sm:$0xf] (!%p316_p9)  ;;  %v1164_v5 = vmov (!%p316_p9), 839922192   ;;  %vm397_vm1 = vcmask (!%p316_p9), 31744  }
   0xf   : > { %362 = vperm.xlu0 (!%p316_p9), %1095, %v359_v0   ;;  %470 = vmatprep.mubr.f32.mxu1 (!%p316_p9), %v1163_v3  ;;  %v389_v4 = vld [vmem:[%s1421_s4] sm:$0x3] (!%p316_p9)  ;;  %v365_v6 = vunpack.c.l.s4 (!%p316_p9), %v1164_v5  ;;  %v1290_v9 = vshrl.u32 (!%p316_p9), %v367_v7, 7  ;;  %s1165_s27 = smov (!%p316_p9), 16   ;;  %s1166_s28 = smov (!%p316_p9), 15   ;;  %v1308_v30 = vand.u32 (!%p316_p9), 127, %v367_v7 }
  0x10   : > { %847 = vmatprep.mubr.f32.mxu0 (!%p316_p9), %v1163_v3  ;;  %392 = vperm.xlu1 (!%p316_p9), %1096, %v389_v4   ;;  %v388_v20 = vld [vmem:[%s1420_s3] sm:$0x3] (!%p316_p9)  ;;  %s1167_s29 = smov (!%p316_p9), 1   ;;  %s1168_s30 = smov (!%p316_p9), 127   ;;  %v1319_v33 = vld [vmem:[%s1426_s9 + $0x8] sm:$0xff] (!%p316_p9)  ;;  %vm692_vm10 = vcmask (!%p316_p9), 1041408  }
  0x11   : > { %v366_v8 = vunpack.c.0.s8 (!%p316_p9), %v365_v6  ;;  %s1171_s18 = smov (!%p316_p9), 17   ;;  %s1172_s20 = smov (!%p316_p9), 111   ;;  %v682_v28 = vld [vmem:[%s1423_s6] sm:$0x3] (!%p316_p9)  ;;  %v513_v31 = vsub.s32 (!%p316_p9), 1, %v1290_v9  ;;  %v538_v34 = vsub.s32 (!%p316_p9), 2, %v1290_v9 }
  0x12   : > { %v1314_v32 = vld [vmem:[%s1426_s9] sm:$0xff] (!%p316_p9)  ;;  %vm508_vm2 = vcmp.lt.s32.totalorder (!%p316_p9), %v1308_v30, 16  ;;  %vm533_vm3 = vcmp.lt.s32.totalorder (!%p316_p9), %v1308_v30, 15  ;;  %v563_v45 = vsub.s32 (!%p316_p9), 3, %v1290_v9  ;;  %vm558_vm4 = vcmp.lt.s32.totalorder (!%p316_p9), %v1308_v30, 1 }
  0x13   : > { %376 = vperm.xlu0 (!%p316_p9), %1095, %v373_v2   ;;  %v369_v10 = vsub.s32 (!%p316_p9), %v366_v8, %v1290_v9  ;;  %v514_v35 = vrot.slane (!%p316_p9), %v1314_v32, %v513_v31  ;;  %v518_v36 = vrot.slane (!%p316_p9), %v1319_v33, %v513_v31  ;;  %v539_v41 = vrot.slane (!%p316_p9), %v1314_v32, %v538_v34 }
  0x14   : > { %v543_v44 = vrot.slane (!%p316_p9), %v1319_v33, %v538_v34  ;;  %v590_v52 = vsub.s32 (!%p316_p9), 5, %v1290_v9  ;;  %v564_v55 = vrot.slane (!%p316_p9), %v1314_v32, %v563_v45  ;;  %v568_v56 = vrot.slane (!%p316_p9), %v1319_v33, %v563_v45 }
  0x15   : > { %s354_s11 = scalar_select %p353_p10, %s1250_s17, 1  ;;  %vm585_vm5 = vcmp.lt.s32.totalorder %v1308_v30, 127  ;;  %v615_v4 = vsub.s32 6, %v1290_v9  ;;  %vm610_vm6 = vcmp.lt.s32.totalorder %v1308_v30, 113  ;;  %vm635_vm7 = vcmp.lt.s32.totalorder %v1308_v30, 112 }
  0x16   : > { %v591_v63 = vrot.slane %v1314_v32, %v590_v52  ;;  %v595_v2 = vrot.slane %v1319_v33, %v590_v52  ;;  %vm489_vm8 = vcmp.lt.s32.totalorder %v1308_v30, 17  ;;  %vm660_vm9 = vcmp.lt.s32.totalorder %v1308_v30, 111 }
  0x17   : > { %s1037_s12 = sshll.u32 %s354_s11, 3  ;;  %s1169_s11 = smov 113   ;;  %vm688_vm11 = vcmask 146432   ;;  %vm854_vm12 = vcmask 15360  }
  0x18   : > { %s357_s21 = scalar_lea.vmem %s1417_s0, %s1037_s12  ;;  %s1170_s12 = smov 112  }
  0x19   : > { %v358_v13 = vld [vmem:[%s357_s21] sm:$0xff] }
  0x1a   : > { %v775_v29 = vcombine.high %v358_v13, %v358_v13 }
  0x1c   : > { %1026 = vmatprep.subr.msk.mxu0 %vm401_vm0, %v775_v29 }
  0x1d   : > { %1027 = vmatpush1.msk.msra.mxu0 %vm401_vm0, %v358_v13 }
  0x8e   : > { %v363_v11 = vpop.permute.xlu0 %362 }
  0x8f   : > { %v370_v12 = vrot.slane %v363_v11, %v369_v10  ;;  %v393_v21 = vpop.permute.xlu1 %392 }
  0x91   : > { %v372_v15 = vmul.f32 %v370_v12, %v358_v13  ;;  %v640_v12 = vsub.s32 7, %v1290_v9 }
  0x92   : > { %v377_v14 = vpop.permute.xlu0 %376 }
  0x93   : > { %v384_v16 = vrot.slane %v377_v14, %v369_v10 }
  0x95   : > { %v386_v17 = vadd.f32 %v384_v16, %v372_v15  ;;  %v616_v15 = vrot.slane %v1314_v32, %v615_v4  ;;  %v620_v16 = vrot.slane %v1319_v33, %v615_v4 }
  0x97   : > { %v387_v18 = vmax.f32 %v386_v17, 0.0 }
  0x99   : > { %v396_v19 = vcombine.high %v387_v18, %v387_v18 }
  0x9b   : > { %1018 = vmatprep.subr.msk.mxu1 %vm401_vm0, %v396_v19 }
  0x9c   : > { %1019 = vmatpush1.msk.msra.mxu1 %vm401_vm0, %v387_v18 }
  0x9d   : > { %1020 = vmatmul.mubr.msk.f32.vlgmr.msra.gmra.mrb[0].mxu1 %vm397_vm1, %v388_v20 }
  0x9e   : > { %763 = vmatprep.mubr.f32.mxu1 %v1163_v3 }
 0x170   : > { %v472_v22 = vpop.f32.mrb[0].mxu1 }
 0x171   : > { %v473_v23 = vadd.f32 %v472_v22, %v393_v21  ;;  %v474_v24 = vpop.f32.mrb[1].mxu1 }
 0x172   : > { %v475_v25 = vadd.f32 %v474_v24, %v393_v21 }
 0x173   : > { %v477_v26 = vmax.f32 %v473_v23, 0.0  ;;  %v641_v23 = vrot.slane %v1314_v32, %v640_v12 }
 0x174   : > { %v478_v27 = vmax.f32 %v475_v25, 0.0 }
 0x175   : > { %579 = vst [vmem:[#allocation2 + $0x10] sm:$0x3] %v477_v26  ;;  %504 = vrot.lane.b32.xlu1 %v477_v26, %s1165_s27 }
 0x176   : > { %580 = vst [vmem:[#allocation2 + $0x18] sm:$0x3] %v478_v27  ;;  %506 = vrot.lane.b32.xlu0 %v478_v27, %s1165_s27 }
 0x179   : > { %529 = vrot.lane.b32.xlu1 %v477_v26, %s1166_s28 }
 0x17a   : > { %531 = vrot.lane.b32.xlu0 %v478_v27, %s1166_s28 }
 0x17d   : > { %554 = vrot.lane.b32.xlu1 %v477_v26, %s1167_s29 }
 0x17e   : > { %556 = vrot.lane.b32.xlu0 %v478_v27, %s1167_s29  ;;  %s350_s29 = sand.u32 1, %s1152_s14  }
 0x17f   : > { %s938_s26 = scalar_lea.sflag [#allocation4], %s350_s29 }
 0x181   : > { %581 = vrot.lane.b32.xlu1 %v477_v26, %s1168_s30 }
 0x182   : > { %583 = vrot.lane.b32.xlu0 %v478_v27, %s1168_s30  ;;  %s1015_s30 = sshll.u32 %s350_s29, 4 }
 0x185   : > { %606 = vrot.lane.b32.xlu1 %v477_v26, %s1169_s11 }
 0x186   : > { %608 = vrot.lane.b32.xlu0 %v478_v27, %s1169_s11  ;;  %s352_s11 = scalar_lea.vmem [#allocation3], %s1015_s30 }
 0x189   : > { %631 = vrot.lane.b32.xlu1 %v477_v26, %s1170_s12 }
 0x18a   : > { %633 = vrot.lane.b32.xlu0 %v478_v27, %s1170_s12  ;;  %s952_s12 = sshll.u32 %s352_s11, 4  ;;  %s1372_s12 = int_to_ptr.vmem [resolvable:$true] %s952_s12 }
 0x18b   : > { %s1098_s27 = scalar_lea.vmem %s1372_s12, 256 }
 0x18c   : > { %p1099_p11 = scmp.ne.s32.totalorder %s1372_s12, %s1098_s27 }
 0x18d   : > { %483 = vrot.lane.b32.xlu1 %v477_v26, %s1171_s18 }
 0x18e   : > { %485 = vrot.lane.b32.xlu0 %v478_v27, %s1171_s18  ;;  %s1038_s18 = sshll.u32 %s1250_s17, 8  ;;  %p1100_p12 = pnand %p1099_p11, %p1267_p5 }
 0x18f   : > { %s1377_s25 = scalar_lea.hbm %s1427_s10, %s1038_s18  ;;  %s1173_s17 = smov [#allocation3]  }
 0x190   : > { %p1101_p13 = pneg %p1100_p12  ;;  %s1102_s28 = sshll.u32 %s1173_s17, 4  ;;  %s1103_s28 = int_to_ptr.vmem [resolvable:$false] %s1102_s28 }
 0x191   : > { %656 = vrot.lane.b32.xlu1 %v477_v26, %s1172_s20  ;;  %v645_v26 = vrot.slane %v1319_v33, %v640_v12  ;;  %s1104_s30 = scalar_lea.vmem %s1103_s28, 512  ;;  %p1105_p0 = scmp.lt.s32.totalorder %s1372_s12, %s1103_s28 }
 0x192   : > { %658 = vrot.lane.b32.xlu0 %v478_v27, %s1172_s20  ;;  %v494_v27 = vsub.s32 0, %v1290_v9  ;;  %p1106_p1 = scmp.lt.s32.totalorder %s1104_s30, %s1098_s27 }
 0x194   : > { %p1107_p2 = por %p1106_p1, %p1105_p0 }
 0x195   : > { %685 = vperm.xlu1 %1096, %v682_v28  }
 0x196   : > { %p1108_p3 = pnand %p1107_p2, %p1101_p13 }
 0x1e7   : > { %v505_v37 = vpop.permute.xlu1 %504 }
 0x1e8   : > { %v507_v38 = vpop.permute.xlu0 %506 }
 0x1e9   : > { %v509_v39 = vsel %vm508_vm2, %v505_v37, %v507_v38  ;;  %v510_v40 = vsel %vm508_vm2, %v507_v38, %v505_v37 }
 0x1ea   : > { %v519_v42 = vmul.f32 %v514_v35, %v510_v40  ;;  %v520_v43 = vmul.f32 %v518_v36, %v509_v39  ;;  %v495_v39 = vrot.slane %v1314_v32, %v494_v27  ;;  %v499_v40 = vrot.slane %v1319_v33, %v494_v27  ;;  %v1022_v32 = vld [vmem:[%s1426_s9 + $0x18] ss:$0 sm:$0xff] }
 0x1eb   : > { %v530_v46 = vpop.permute.xlu1 %529 }
 0x1ec   : > { %v523_v47 = vrot.slane %v519_v42, 6  ;;  %v524_v48 = vrot.slane %v520_v43, 6  ;;  %v532_v49 = vpop.permute.xlu0 %531 }
 0x1ed   : > { %v534_v50 = vsel %vm533_vm3, %v530_v46, %v532_v49  ;;  %v535_v51 = vsel %vm533_vm3, %v532_v49, %v530_v46  ;;  %v1021_v49 = vld [vmem:[%s1426_s9 + $0x10] ss:$0 sm:$0xff] }
 0x1ee   : > { %527 = vst [vmem:[#allocation2] sm:$0xc] %v523_v47  ;;  %528 = vst [vmem:[#allocation2 + $0x8] sm:$0xc] %v524_v48  ;;  %v544_v53 = vmul.f32 %v539_v41, %v535_v51  ;;  %v545_v54 = vmul.f32 %v543_v44, %v534_v50 }
 0x1ef   : > { %v555_v57 = vpop.permute.xlu1 %554 }
 0x1f0   : > { %v548_v58 = vrot.slane %v544_v53, 4  ;;  %v549_v59 = vrot.slane %v545_v54, 4  ;;  %v557_v60 = vpop.permute.xlu0 %556 }
 0x1f1   : > { %v559_v61 = vsel %vm558_vm4, %v555_v57, %v557_v60  ;;  %v560_v62 = vsel %vm558_vm4, %v557_v60, %v555_v57  ;;  %v675_v60 = vld [vmem:[%s1422_s5] sm:$0x3] }
 0x1f2   : > { %552 = vst [vmem:[#allocation2] sm:$0x30] %v548_v58  ;;  %553 = vst [vmem:[#allocation2 + $0x8] sm:$0x30] %v549_v59  ;;  %v569_v0 = vmul.f32 %v564_v55, %v560_v62  ;;  %v570_v1 = vmul.f32 %v568_v56, %v559_v61  ;;  %v773_v62 = vld [vmem:[%s1425_s8] sm:$0xff] }
 0x1f3   : > { %v582_v5 = vpop.permute.xlu1 %581  ;;  %1028 = vmatmul.mubr.msk.f32.vlgmr.msra.gmra.mrb[0].mxu0 %vm397_vm1, %v773_v62 }
 0x1f4   : > { %v573_v6 = vrot.slane %v569_v0, 2  ;;  %v574_v7 = vrot.slane %v570_v1, 2  ;;  %v584_v8 = vpop.permute.xlu0 %583  ;;  %928 = vmatprep.mubr.f32.mxu0 %v1163_v3 }
 0x1f5   : > { %v586_v10 = vsel %vm585_vm5, %v582_v5, %v584_v8  ;;  %v587_v11 = vsel %vm585_vm5, %v584_v8, %v582_v5 }
 0x1f6   : > { %577 = vst [vmem:[#allocation2] sm:$0xc0] %v573_v6  ;;  %578 = vst [vmem:[#allocation2 + $0x8] sm:$0xc0] %v574_v7  ;;  %v596_v13 = vmul.f32 %v591_v63, %v586_v10  ;;  %v597_v14 = vmul.f32 %v595_v2, %v587_v11  ;;  %v772_v7 = vld [vmem:[%s1424_s7] sm:$0xff] }
 0x1f7   : > { %v607_v17 = vpop.permute.xlu1 %606 }
 0x1f8   : > { %v600_v18 = vrot.slane %v596_v13, 6  ;;  %v601_v19 = vrot.slane %v597_v14, 6  ;;  %v609_v20 = vpop.permute.xlu0 %608 }
 0x1f9   : > { %v611_v21 = vsel %vm610_vm6, %v607_v17, %v609_v20  ;;  %v612_v22 = vsel %vm610_vm6, %v609_v20, %v607_v17 }
 0x1fa   : > { %604 = vst [vmem:[#allocation2 + $0x10] sm:$0xc] %v600_v18  ;;  %605 = vst [vmem:[#allocation2 + $0x18] sm:$0xc] %v601_v19  ;;  %v621_v24 = vmul.f32 %v616_v15, %v611_v21  ;;  %v622_v25 = vmul.f32 %v620_v16, %v612_v22 }
 0x1fb   : > { %v632_v28 = vpop.permute.xlu1 %631 }
 0x1fc   : > { %v625_v29 = vrot.slane %v621_v24, 4  ;;  %v626_v31 = vrot.slane %v622_v25, 4  ;;  %v634_v34 = vpop.permute.xlu0 %633 }
 0x1fd   : > { %v636_v35 = vsel %vm635_vm7, %v632_v28, %v634_v34  ;;  %v637_v36 = vsel %vm635_vm7, %v634_v34, %v632_v28 }
 0x1fe   : > { %629 = vst [vmem:[#allocation2 + $0x10] sm:$0x30] %v625_v29  ;;  %630 = vst [vmem:[#allocation2 + $0x18] sm:$0x30] %v626_v31  ;;  %v646_v37 = vmul.f32 %v641_v23, %v636_v35  ;;  %v647_v38 = vmul.f32 %v645_v26, %v637_v36 }
 0x1ff   : > { %v484_v41 = vpop.permute.xlu1 %483 }
 0x200   : > { %v650_v42 = vrot.slane %v646_v37, 2  ;;  %v651_v43 = vrot.slane %v647_v38, 2  ;;  %v486_v9 = vpop.permute.xlu0 %485 }
 0x201   : > { %v490_v44 = vsel %vm489_vm8, %v484_v41, %v486_v9  ;;  %v491_v45 = vsel %vm489_vm8, %v486_v9, %v484_v41 }
 0x202   : > { %654 = vst [vmem:[#allocation2 + $0x10] sm:$0xc0] %v650_v42  ;;  %655 = vst [vmem:[#allocation2 + $0x18] sm:$0xc0] %v651_v43  ;;  %v500_v46 = vmul.f32 %v495_v39, %v491_v45  ;;  %v501_v47 = vmul.f32 %v499_v40, %v490_v44 }
 0x203   : > { %v657_v48 = vpop.permute.xlu1 %656 }
 0x204   : > { %502 = vst [vmem:[#allocation2] sm:$0x3] %v500_v46  ;;  %503 = vst [vmem:[#allocation2 + $0x8] sm:$0x3] %v501_v47  ;;  %v659_v33 = vpop.permute.xlu0 %658 }
 0x205   : > { %v661_v50 = vsel %vm660_vm9, %v657_v48, %v659_v33  ;;  %v662_v51 = vsel %vm660_vm9, %v659_v33, %v657_v48 }
 0x206   : > { %v671_v52 = vmul.f32 %v1021_v49, %v661_v50  ;;  %v672_v53 = vmul.f32 %v1022_v32, %v662_v51 }
 0x208   : > { %673 = vst [vmem:[#allocation2 + $0x20] sm:$0x3] %v671_v52  ;;  %674 = vst [vmem:[#allocation2 + $0x28] sm:$0x3] %v672_v53 }
 0x209   : > { %v679_v54 = vld [vmem:[#allocation2 + $0x18] sm:$0xff]  ;;  %v678_v56 = vld [vmem:[#allocation2 + $0x10] sm:$0xff] }
 0x20b   : > { %v677_v30 = vld [vmem:[#allocation2 + $0x8] sm:$0xff]  ;;  %v676_v55 = vld [vmem:[#allocation2] sm:$0xff] }
 0x20c   : > { %v1039_v57 = vpack.c.bf16 %v679_v54, %v677_v30  ;;  %v1041_v58 = vpack.c.bf16 %v678_v56, %v676_v55 }
 0x20e   : > { %1040 = vmatprep.subr.bf16.mxu1 %v1039_v57 }
 0x20f   : > { %1042 = vmatpush1.bf16.msra.mxu1 %v1041_v58  ;;  %v681_v59 = vld [vmem:[#allocation2 + $0x28] sm:$0x3]  ;;  %v680_v61 = vld [vmem:[#allocation2 + $0x20] sm:$0x3] }
 0x210   : > { %1023 = vmatprep.subr.msk.mxu1 %vm692_vm10, %v681_v59 }
 0x213   : > { %1024 = vmatpush1.msk.msra.mxu1 %vm692_vm10, %v680_v61 }
 0x214   : > { %1025 = vmatmul.mubr.msk.f32.vlgmr.msra.gmra.mrb[2].mxu1 %vm688_vm11, %v675_v60  ;;  %v686_v63 = vpop.permute.xlu1 %685 }
 0x2e7   : > { %v765_v0 = vpop.f32.mrb[2].mxu1 }
 0x2e8   : > { %v766_v1 = vadd.f32 %v765_v0, %v686_v63  ;;  %v767_v2 = vpop.f32.mrb[3].mxu1 }
 0x2e9   : > { %v768_v4 = vadd.f32 %v767_v2, %v686_v63 }
 0x2ea   : > { %v770_v6 = vmax.f32 %v766_v1, 0.0 }
 0x2eb   : > { %v771_v5 = vmax.f32 %v768_v4, 0.0 }
 0x2ed   : > { %1029 = vmatprep.subr.msk.mxu0 %vm692_vm10, %v771_v5 }
 0x2ee   : > { %1030 = vmatpush1.msk.msra.mxu0 %vm692_vm10, %v770_v6 }
 0x2ef   : > { %1031 = vmatmul.mubr.msk.f32.vlgmr.msra.gmra.mrb[0].mxu0 %vm854_vm12, %v772_v7 }
 0x3c2   : > { %v930_v3 = vpop.f32.mrb[0].mxu0 }
 0x3c3   : > { %935 = vst [vmem:[%s352_s11] sm:$0xff] %v930_v3  ;;  %v932_v8 = vpop.f32.mrb[1].mxu0 }
 0x3c4   : > { %936 = vst [vmem:[%s352_s11 + $0x8] sm:$0xff] %v932_v8 }
 0x3c5   : > { %1111 = shalt.err (!%p1108_p3)
}
 0x3c6   : > { %s1112_s29 = scalar_lea.hbm %s1377_s25, 256  ;;  %s1116_s20 = scalar_lea.hbm %s1427_s10, 512 }
 0x3c7   : > { %p1113_p4 = scmp.ne.s32.totalorder %s1377_s25, %s1112_s29  ;;  %p1117_p9 = scmp.lt.u32.totalorder %s1377_s25, %s1427_s10 }
 0x3c8   : > { %p1118_p10 = scmp.lt.u32.totalorder %s1116_s20, %s1112_s29  ;;  %p1120_p12 = scmp.lt.u32.totalorder %s1112_s29, %s1377_s25 }
 0x3c9   : > { %p1114_p7 = pnand %p1113_p4, %p1267_p5 }
 0x3ca   : > { %p1119_p11 = por %p1118_p10, %p1117_p9 }
 0x3cb   : > { %p1115_p8 = pneg %p1114_p7 }
 0x3cc   : > { %p1121_p13 = por %p1120_p12, %p1119_p11 }
 0x3ce   : > { %p1122_p0 = pnand %p1121_p13, %p1115_p8 }
 0x3d0   : > { %1125 = shalt.err (!%p1122_p0)
}
 0x3d1   : > { %1045 = dma.vmem_to_hbm [thread:$0]  (%p1267_p5), %s1372_s12, 256, %s1377_s25, %s938_s26  }
 0x3d2 PF: > { %p1051_p1 = scmp.ge.s32.totalorder %s1160_s16, 2  ;;  %s964_s27 = sand.u32 1, %s1148_s13  }
 0x3d3   : > { %s965_s28 = scalar_lea.sflag [#allocation4], %s964_s27 }
 0x3d4   : > { %p1048_p2 = pnand %p1051_p1, %p1271_p6 }
 0x3d6   : > { %1143 = dma.done.wait (!%p1048_p2), %s965_s28, 256  }
 0x3d7   : > { %1145 = vsyncadd (!%p1048_p2), %s965_s28, 4294967040  ;;  %p20_p3 = scmp.ge.s32.totalorder %s1254_s19, 4   ;;  %s1430_s13 = smov %s1152_s14 }
 0x3d8   : > { %s1431_s14 = smov %s1156_s15  ;;  %s1432_s15 = smov %s1265_s22 }
 0x3d9   : > { %s1433_s16 = smov %s1254_s19  ;;  %22 = sbr.rel (!%p20_p3) target bundleno = 3 (0x3), region = 95 }
 0x3e0   :  { %970 = vsyncpa [#allocation4], 1 }
 0x3e1   :  { %972 = vsyncpa [#allocation4 + $0x1], 1 }

</bundles_post_ra>
